<compile_context>
chip_gen: v7x
topology: tpu7x:2x2x1
jax: 0.10.0
libtpu: 0.0.40
codegen_flags: <defaults>
</compile_context>

<pallas_src>
import functools

import jax
import jax.numpy as jnp
from jax.experimental import pallas as pl
from jax.experimental.pallas import tpu as pltpu

# ----------------------------------------------------------------------------
# Module "hyper-parameters" (deterministic, in-script — mirrors __init__).
# ----------------------------------------------------------------------------
SAMPLE_RATE = 16000
MIN_FREQ = 50.0          # param_ranges['f0']['min']
MAX_FREQ = 2000.0        # param_ranges['f0']['max']
HOP_LENGTH = 256
OUT_SIZE = 8             # small `out_size` (time_dim) for the tiny example

_INV_RANGE = 1.0 / (MAX_FREQ - MIN_FREQ)
_VMEM_LIMIT_BYTES = 32 * 1024 * 1024   # explicit; safe on v5e/v6e/v7x


def _cdiv(a, b):
    return -(-a // b)


def _round_up(x, m):
    return ((x + m - 1) // m) * m


def _tpu_budget():
    """Return (per-output-tile byte budget, force >=2 parallel grid steps?)."""
    try:
        kind = jax.devices()[0].device_kind.lower()
    except Exception:
        kind = ""
    if "v7" in kind:
        # v7x: ~3.2 TB/s HBM wants >=4 MiB tiles to hide the ~0.35 us grid-step
        # overhead, but only 64 MiB VMEM -> keep the double-buffered footprint
        # modest.  2 TensorCores -> prefer a grid with >=2 parallel steps.
        return 4 * 1024 * 1024, True
    # v5e/v6e: 1-2 MiB tiles already sit >80-85% of the HBM roofline; larger
    # tiles only add VMEM pressure.  Single TensorCore -> no forced split.
    return 2 * 1024 * 1024, False


def _pick_tiles(batch, frames, *, budget_bytes, want_split, elem_bytes=4):
    """Pick (tb, tf): lane tile a multiple of 128, sublane tile a multiple of 8
    (or full-dim blocks when the dims are too small to tile legally), sized so
    one output tile is roughly `budget_bytes`.  Ragged tails are handled by
    cdiv grids.  On 2-TC chips, split one axis into >=2 aligned blocks if the
    grid would otherwise collapse to a single step."""
    # Lane (frame) tile.
    if frames > 128:
        tf_cap = max(128, (budget_bytes // (8 * elem_bytes)) // 128 * 128)
        tf = min(_round_up(frames, 128), tf_cap)
    else:
        tf = frames                          # full-dim block (always legal)
    # Sublane (batch) tile.
    if batch > 8:
        tb_cap = max(8, (budget_bytes // max(tf * elem_bytes, 1)) // 8 * 8)
        tb = min(_round_up(batch, 8), tb_cap)
    else:
        tb = batch                           # full-dim block (always legal)
    # v7x megacore: make sure a 'parallel' axis has >=2 grid steps when a
    # legally aligned split exists (no-op on 1-TC generations).
    if want_split and _cdiv(batch, tb) * _cdiv(frames, tf) == 1:
        if batch > 8:
            tb = max(8, _round_up(_cdiv(batch, 2), 8))
        elif frames > 128:
            tf = max(128, _round_up(_cdiv(frames, 2), 128))
    return tb, tf


# ----------------------------------------------------------------------------
# Pallas kernels
# ----------------------------------------------------------------------------
def _known_f0_kernel(f0_ref, out_ref, *, scale):
    """known_f0 path: (tb, 1) f32 column -> lane-dense (tb, tf) constant rows.

    The affine rescale is applied once to the column; the fill is a single
    column->lane broadcast and one store per tile (no sublane stitching, no
    per-row scalar unroll)."""
    col = f0_ref[...]                        # (tb, 1) float32
    if scale:
        col = (col - MIN_FREQ) * _INV_RANGE
    out_ref[...] = jnp.broadcast_to(col, out_ref.shape)


def _f0_postprocess_kernel(freq_ref, out_ref, *, scale, tf):
    """dio/crepe path post-processing on one tile.

    freq_ref : (tb, in_lane) tile of the raw f0 curve (any float dtype; the
               cast happens here, not in the wrapper)
    out_ref  : (tb, tf) float32 tile, rescaled + clamped to [0, 1]
    """
    f = freq_ref[:, :tf].astype(jnp.float32)  # static slice; no-op when widths match
    if scale:
        f = (f - MIN_FREQ) * _INV_RANGE
    out_ref[...] = jnp.clip(f, 0.0, 1.0)


# ----------------------------------------------------------------------------
# Python wrappers (shape plumbing around the kernels)
# ----------------------------------------------------------------------------
def f0_encoder_known(x, known_f0, scale=True, hop_length=HOP_LENGTH):
    """known_f0 path.  x: (B, n_samples) audio, known_f0: (B, 1, 1) (or (B,)).
    Returns (B, n_samples // hop_length, 1) float32, matching
    known_f0.repeat(1, n, 1).view(B, -1, 1) (+ optional rescale, no clamp,
    exactly like the torch module)."""
    B, n_samples = x.shape
    n_frames = n_samples // hop_length
    f0_col = known_f0.reshape(B, 1).astype(jnp.float32)   # (B, 1) column

    budget, want_split = _tpu_budget()
    tb, tf = _pick_tiles(B, n_frames, budget_bytes=budget, want_split=want_split)
    grid = (_cdiv(B, tb), _cdiv(n_frames, tf))

    out = pl.pallas_call(
        functools.partial(_known_f0_kernel, scale=scale),
        out_shape=jax.ShapeDtypeStruct((B, n_frames), jnp.float32),
        grid=grid,
        in_specs=[pl.BlockSpec((tb, 1), lambda bi, fi: (bi, 0))],
        out_specs=pl.BlockSpec((tb, tf), lambda bi, fi: (bi, fi)),
        compiler_params=pltpu.CompilerParams(
            dimension_semantics=("parallel", "parallel"),
            vmem_limit_bytes=_VMEM_LIMIT_BYTES),
    )(f0_col)
    # Trailing channel dim added outside the kernel (free metadata reshape).
    return out.reshape(B, n_frames, 1)


def f0_encoder_estimated(x, freq, scale=True, time_dim=OUT_SIZE):
    """dio/crepe path post-processing.  `freq` is the (B, n_frames_raw)
    frame-wise f0 curve the external pitch tracker would have produced.
    Returns clamp(scaled_freq)[:, :time_dim, None], shape (B, time_dim, 1)."""
    # TODO(synk): the dio / crepe pitch extraction itself (pyworld / crepe,
    # CPU-side signal processing + NN) has no clean Pallas equivalent; the
    # frame-wise f0 curve is taken as an input here.
    del x  # only used for device placement in the original module
    B, n_frames_raw = freq.shape
    # Matches torch's `[:, :time_dim]` assuming the tracker produced enough
    # frames (the torch path would silently return fewer frames otherwise).
    assert n_frames_raw >= time_dim, "pitch curve shorter than out_size"

    budget, want_split = _tpu_budget()
    tb, tf = _pick_tiles(B, time_dim, budget_bytes=budget, want_split=want_split)

    # Truncation is folded into the BlockSpec: the grid only covers the first
    # `time_dim` frames of `freq`.  When the frame tile is lane-aligned the
    # input block width equals the output tile width; otherwise (small /
    # unaligned time_dim, single frame tile) the input block is capped at 128
    # lanes (or the full raw curve if shorter) instead of pulling the entire
    # raw pitch curve into VMEM, and the kernel slices statically.
    lane_aligned = (tf % 128 == 0)
    if lane_aligned:
        in_lane = tf
        in_index = lambda bi, fi: (bi, fi)
    else:
        in_lane = min(n_frames_raw, _round_up(tf, 128))  # legal: full dim or %128
        in_index = lambda bi, fi: (bi, 0)
    grid = (_cdiv(B, tb), _cdiv(time_dim, tf))

    out = pl.pallas_call(
        functools.partial(_f0_postprocess_kernel, scale=scale, tf=tf),
        out_shape=jax.ShapeDtypeStruct((B, time_dim), jnp.float32),
        grid=grid,
        in_specs=[pl.BlockSpec((tb, in_lane), in_index)],
        out_specs=pl.BlockSpec((tb, tf), lambda bi, fi: (bi, fi)),
        compiler_params=pltpu.CompilerParams(
            dimension_semantics=("parallel", "parallel"),
            vmem_limit_bytes=_VMEM_LIMIT_BYTES),
    )(freq)  # raw dtype, raw length: cast + truncation handled by the kernel
    return out.reshape(B, time_dim, 1)


# ----------------------------------------------------------------------------
# Example / smoke test
# ----------------------------------------------------------------------------
if __name__ == "__main__":
    key = jax.random.PRNGKey(0)
    k1, k2, k3, k4, k5 = jax.random.split(key, 5)

    # ---------------- tiny shapes (unaligned / full-dim-block path) ----------
    B = 2
    n_samples = 4096                      # -> 4096 // 256 = 16 frames
    x = jax.random.normal(k1, (B, n_samples), dtype=jnp.float32)

    known_f0 = jax.random.uniform(k2, (B, 1, 1), minval=80.0, maxval=400.0)
    out_known = jax.block_until_ready(f0_encoder_known(x, known_f0, scale=True))

    ref_known = jnp.broadcast_to(known_f0.reshape(B, 1, 1),
                                 (B, n_samples // HOP_LENGTH, 1))
    ref_known = (ref_known - MIN_FREQ) / (MAX_FREQ - MIN_FREQ)
    assert out_known.shape == (B, n_samples // HOP_LENGTH, 1)
    assert jnp.allclose(out_known, ref_known, atol=1e-5)

    n_frames_raw = 20
    freq = jax.random.uniform(k3, (B, n_frames_raw), minval=0.0, maxval=2500.0)
    out_est = jax.block_until_ready(
        f0_encoder_estimated(x, freq, scale=True, time_dim=OUT_SIZE))

    ref_est = (freq[:, :OUT_SIZE] - MIN_FREQ) / (MAX_FREQ - MIN_FREQ)
    ref_est = jnp.clip(ref_est, 0.0, 1.0)[..., None]
    assert out_est.shape == (B, OUT_SIZE, 1)
    assert jnp.allclose(out_est, ref_est, atol=1e-5)

    # ------------- default out_size=250 shapes (lane-aligned tiled path) -----
    B2 = 4
    time_dim2 = 250                       # module default out_size
    n_samples2 = time_dim2 * HOP_LENGTH   # -> exactly 250 frames
    x2 = jax.random.normal(k1, (B2, n_samples2), dtype=jnp.float32)

    known_f0_2 = jax.random.uniform(k4, (B2, 1, 1), minval=80.0, maxval=400.0)
    out_known2 = jax.block_until_ready(f0_encoder_known(x2, known_f0_2, scale=True))
    ref_known2 = jnp.broadcast_to(known_f0_2.reshape(B2, 1, 1), (B2, time_dim2, 1))
    ref_known2 = (ref_known2 - MIN_FREQ) / (MAX_FREQ - MIN_FREQ)
    assert out_known2.shape == (B2, time_dim2, 1)
    assert jnp.allclose(out_known2, ref_known2, atol=1e-5)

    n_frames_raw2 = 256
    freq2 = jax.random.uniform(k5, (B2, n_frames_raw2), minval=0.0, maxval=2500.0)
    out_est2 = jax.block_until_ready(
        f0_encoder_estimated(x2, freq2, scale=True, time_dim=time_dim2))
    ref_est2 = (freq2[:, :time_dim2] - MIN_FREQ) / (MAX_FREQ - MIN_FREQ)
    ref_est2 = jnp.clip(ref_est2, 0.0, 1.0)[..., None]
    assert out_est2.shape == (B2, time_dim2, 1)
    assert jnp.allclose(out_est2, ref_est2, atol=1e-5)

    print("KERNEL_OK")
</pallas_src>

<mosaic_0001>
module attributes {stable_mosaic.version = 11 : i64} {
  func.func @_known_f0_kernel(%arg0: i32, %arg1: i32, %arg2: memref<2x1xf32, #tpu.memory_space<vmem>>, %arg3: memref<2x16xf32, #tpu.memory_space<vmem>>) attributes {dimension_semantics = [#tpu.dimension_semantics<parallel>, #tpu.dimension_semantics<parallel>], iteration_bounds = array<i64: 1, 1>, scalar_prefetch = 0 : i64, scratch_operands = 0 : i64, tpu.core_type = #tpu.core_type<tc>, window_params = [{transform_indices = @transform_0, window_bounds = array<i64: 2, 1>}, {transform_indices = @transform_1, window_bounds = array<i64: 2, 16>}]} {
    %c0 = arith.constant 0 : index
    %c0_0 = arith.constant 0 : index
    %0 = vector.load %arg2[%c0, %c0_0] : memref<2x1xf32, #tpu.memory_space<vmem>>, vector<2x1xf32>
    %cst = arith.constant 5.000000e+01 : f32
    %1 = vector.broadcast %cst : f32 to vector<2x1xf32>
    %2 = arith.subf %0, %1 : vector<2x1xf32>
    %cst_1 = arith.constant 5.12820494E-4 : f32
    %3 = vector.broadcast %cst_1 : f32 to vector<2x1xf32>
    %4 = arith.mulf %2, %3 : vector<2x1xf32>
    %5 = vector.shape_cast %4 : vector<2x1xf32> to vector<2x1xf32>
    %6 = vector.broadcast %5 : vector<2x1xf32> to vector<2x16xf32>
    %c0_2 = arith.constant 0 : index
    %c0_3 = arith.constant 0 : index
    %7 = vector.load %arg3[%c0_2, %c0_3] : memref<2x16xf32, #tpu.memory_space<vmem>>, vector<2x16xf32>
    tpu.vector_store %arg3[%c0_2, %c0_3], %6 {strides = array<i32>} : memref<2x16xf32, #tpu.memory_space<vmem>>, vector<2x16xf32>,
    return
  }
  func.func @transform_0(%arg0: i32, %arg1: i32) -> (i32, i32) {
    %c0_i32 = arith.constant 0 : i32
    %c0_i32_0 = arith.constant 0 : i32
    return %arg0, %c0_i32 : i32, i32
  }
  func.func @transform_1(%arg0: i32, %arg1: i32) -> (i32, i32) {
    %c0_i32 = arith.constant 0 : i32
    return %arg0, %arg1 : i32, i32
  }
}

</mosaic_0001>

<bundles_post_ra>
// kernel: tpu_custom_call.1
= control target key start
LH: loop header
LB: loop body
LE: loop exit
PB: predicated region body
PF: predicated region fallthrough
CT: control target
= control target key end

     0   :  { %s88_s0 = inlined_call_operand.vmem [shape: f32[2,1], index: 0, kind: input, shape index: {}]   ;;  %s89_s1 = inlined_call_operand.hbm [shape: f32[2,16], index: 1, kind: output, shape index: {}]  }
   0x1   :  { %v9_v0 = vld [vmem:[%s88_s0] sm:$0x3] }
   0x2   :  { %6 = vsyncpa [#allocation3], 0  ;;  %v61_v1 = vmov 0   ;;  %v33_v2 = vadd.f32 -50.0, %v9_v0  ;;  %s62_s8 = smov [#allocation2]   ;;  %vm17_vm0 = vcmask 123904  }
   0x3   :  { %36 = vset.pattern.permute.xlu0 %v61_v1  ;;  %s25_s9 = sshll.u32 %s62_s8, 4  ;;  %s26_s9 = int_to_ptr.vmem [resolvable:$true] %s25_s9 }
   0x4   :  { %v11_v3 = vmul.f32 0.0005128205, %v33_v2  ;;  %s37_s10 = scalar_lea.vmem %s26_s9, 32  ;;  %p42_p1 = scmp.lt.s32.totalorder %s26_s9, %s26_s9 }
   0x5   :  { %p38_p0 = scmp.ne.s32.totalorder %s26_s9, %s37_s10  ;;  %p43_p2 = scmp.lt.s32.totalorder %s37_s10, %s37_s10 }
   0x6   :  { %14 = vperm.xlu0 %36, %v11_v3  }
   0x7   :  { %p44_p3 = por %p43_p2, %p42_p1 }
   0x9   :  { %p45_p4 = pnand %p44_p3, %p38_p0 }
  0x85   :  { %v15_v4 = vpop.permute.xlu0 %14 }
  0x86   :  { %18 = vst.msk [vmem:[#allocation2] sm:$0x3] %vm17_vm0, %v15_v4 }
  0x87   :  { %48 = shalt.err (!%p45_p4)
}
  0x88   :  { %s49_s12 = scalar_lea.hbm %s89_s1, 32 }
  0x89   :  { %p50_p5 = scmp.ne.s32.totalorder %s89_s1, %s49_s12  ;;  %p53_p6 = scmp.lt.u32.totalorder %s49_s12, %s89_s1 }
  0x8b   :  { %p55_p7 = pnand %p53_p6, %p50_p5 }
  0x8d   :  { %58 = shalt.err (!%p55_p7)
}
  0x8e   :  { %28 = dma.vmem_to_hbm [thread:$0]  %s26_s9, 32, %s89_s1, [#allocation3]  }
  0x8f   :  { %59 = dma.done.wait [#allocation3], 32  }
  0x90   :  { %60 = vsyncadd [#allocation3], 4294967264 }
  0x91   :  { %32 = vsyncpa [#allocation3], 1 }

</bundles_post_ra>
